<compile_context>
chip_gen: v6e
topology: v6e:2x2x1
jax: 0.10.0
libtpu: 0.0.40
codegen_flags: <defaults>
</compile_context>

<pallas_src>
import functools

import jax
import jax.numpy as jnp
from jax.experimental import pallas as pl
from jax.experimental.pallas import tpu as pltpu

_SQRT_2_OVER_PI = 0.7978845608028654


def _gelu_tanh(h):
    # tanh-approximate GELU; tanh runs on the EUP so it hides under MXU time.
    # TODO(synk): torch's default nn.GELU() is erf-based; swap in an erf GELU
    # if strict (<1e-3) parity with PyTorch is required.
    return 0.5 * h * (1.0 + jnp.tanh(_SQRT_2_OVER_PI * (h + 0.044715 * h * h * h)))


def _mlp_kernel(x_ref, w1_ref, b1_ref, w2_ref, b2_ref, o_ref, *, h_chunk, n_chunks):
    """One grid step == one (TM, D_in) tile of flattened rows.

    x_ref : (TM, D_in)      w1_ref: (D_in, H)   b1_ref: (1, H)      [f32]
    w2_ref: (H, D_out)      b2_ref: (1, D_out)  [f32]
    o_ref : (TM, D_out)

    The hidden dim is walked in h_chunk-wide slices so fc1-matmul(c+1) can
    co-issue with GELU(c), and the f32 intermediate stays (TM, h_chunk).
    """
    x = x_ref[...]                                   # (TM, D_in), compute dtype
    tm = x.shape[0]
    d_out = o_ref.shape[-1]

    acc = jnp.zeros((tm, d_out), jnp.float32)        # fc2 accumulator, f32
    for c in range(n_chunks):                        # static trip count
        lo = c * h_chunk
        hi = lo + h_chunk
        # fc1 chunk: (TM, D_in) @ (D_in, HC) -> f32 on the MXU.
        h = jnp.dot(x, w1_ref[:, lo:hi], preferred_element_type=jnp.float32)
        h = h + b1_ref[:, lo:hi]
        h = _gelu_tanh(h)                            # f32 on VPU/EUP
        # fc2 chunk: cast activations to the MXU operand dtype, accumulate f32.
        acc = acc + jnp.dot(h.astype(w2_ref.dtype), w2_ref[lo:hi, :],
                            preferred_element_type=jnp.float32)

    o_ref[...] = (acc + b2_ref[...]).astype(o_ref.dtype)


def _round_up(x, m):
    return ((x + m - 1) // m) * m


def _tpu_vmem_bytes():
    try:
        return int(pltpu.get_tpu_info().vmem_capacity_bytes)
    except Exception:
        return 64 * 1024 * 1024  # conservative: v7x physical VMEM per TC


def _pick_row_tile(m, itemsize, target):
    """Row tile: sublane-aligned (16 for 16-bit dtypes, else 8), capped at
    `target`, and split once so there are >= 2 grid blocks when possible
    (dual-TC v7x load balance)."""
    align = 16 if itemsize == 2 else 8
    tm = min(_round_up(target, align), _round_up(m, align))
    if _round_up(m, tm) // tm < 2 and m > align:
        tm = max(align, _round_up(pl.cdiv(m, 2), align))
    return tm


def _pick_hidden_chunk(h, target=512):
    """Largest lane-aligned (multiple-of-128) divisor of H that is <= target;
    falls back to the full H for small hidden sizes."""
    if h <= target:
        return h
    for cand in range(target, 127, -128):
        if h % cand == 0:
            return cand
    return h


def mlp_pallas(x, w1_t, b1, w2_t, b2, *, compute_dtype=None):
    """x: (B, N, D_in); w1_t: (D_in, H); b1: (1, H); w2_t: (H, D_out);
    b2: (1, D_out).  Weights are the transposed nn.Linear weights so the kernel
    computes y = x @ W^T + b directly.  `compute_dtype` (e.g. jnp.bfloat16)
    selects the MXU operand dtype; accumulation is always f32 and the output
    keeps x's dtype."""
    B, N, D_in = x.shape
    H = w1_t.shape[1]
    D_out = w2_t.shape[1]
    out_dtype = x.dtype

    compute_dtype = jnp.dtype(x.dtype if compute_dtype is None else compute_dtype)

    # Flatten rows -> one big lane-dense (M, D_in) matmul operand.
    M = B * N
    x2 = x.reshape(M, D_in).astype(compute_dtype)
    w1c = w1_t.astype(compute_dtype)
    w2c = w2_t.astype(compute_dtype)
    b1f = b1.astype(jnp.float32)                     # biases add to f32 acc
    b2f = b2.astype(jnp.float32)

    vmem_cap = _tpu_vmem_bytes()
    tm_target = 512 if vmem_cap > 64 * 1024 * 1024 else 256   # v5e/v6e vs v7x
    TM = _pick_row_tile(M, compute_dtype.itemsize, tm_target)
    M_pad = _round_up(M, TM)
    if M_pad != M:
        x2 = jnp.pad(x2, ((0, M_pad - M), (0, 0)))   # uniform tiles; sliced off
    grid = (M_pad // TM,)

    HC = _pick_hidden_chunk(H)
    n_chunks = H // HC

    kernel = functools.partial(_mlp_kernel, h_chunk=HC, n_chunks=n_chunks)

    itemsz = compute_dtype.itemsize
    cost = pl.CostEstimate(
        flops=2 * M_pad * D_in * H + 2 * M_pad * H * D_out,
        transcendentals=M_pad * H,
        bytes_accessed=(M_pad * D_in * itemsz
                        + D_in * H * itemsz + H * D_out * itemsz
                        + (H + D_out) * 4
                        + M_pad * D_out * jnp.dtype(out_dtype).itemsize),
    )

    compiler_params = pltpu.CompilerParams(
        dimension_semantics=("parallel",),
        # ~75% of physical VMEM: ~48 MiB on v7x, ~96 MiB on v5e/v6e.
        vmem_limit_bytes=min(int(vmem_cap * 0.75), 100 * 1024 * 1024),
    )

    def build(single_buffer_weights):
        resident = (dict(pipeline_mode=pl.Buffered(1))
                    if single_buffer_weights else {})
        return pl.pallas_call(
            kernel,
            out_shape=jax.ShapeDtypeStruct((M_pad, D_out), out_dtype),
            grid_spec=pltpu.PrefetchScalarGridSpec(
                num_scalar_prefetch=0,
                grid=grid,
                in_specs=[
                    pl.BlockSpec((TM, D_in), lambda i: (i, 0)),              # x tile
                    pl.BlockSpec((D_in, H), lambda i: (0, 0), **resident),   # W1^T
                    pl.BlockSpec((1, H), lambda i: (0, 0), **resident),      # b1
                    pl.BlockSpec((H, D_out), lambda i: (0, 0), **resident),  # W2^T
                    pl.BlockSpec((1, D_out), lambda i: (0, 0), **resident),  # b2
                ],
                out_specs=pl.BlockSpec((TM, D_out), lambda i: (i, 0)),
            ),
            compiler_params=compiler_params,
            cost_estimate=cost,
        )

    try:
        out2 = build(True)(x2, w1c, b1f, w2c, b2f)
    except Exception:
        # Fallback if single-buffering via pl.Buffered(1) is rejected here.
        out2 = build(False)(x2, w1c, b1f, w2c, b2f)

    return out2[:M].reshape(B, N, D_out)


def mlp_reference(x, w1_t, b1, w2_t, b2):
    """Pure-JAX reference mirroring the PyTorch forward (dropout p=0.0)."""
    h = x @ w1_t + b1[0]
    h = _gelu_tanh(h)
    return h @ w2_t + b2[0]


if __name__ == "__main__":
    # Small shapes consistent with the module: (n_samples, n_patches+1, in_features)
    B, N = 2, 8
    D_in, H, D_out = 32, 64, 32

    key = jax.random.PRNGKey(0)
    kx, kw1, kb1, kw2, kb2 = jax.random.split(key, 5)

    x = jax.random.normal(kx, (B, N, D_in), dtype=jnp.float32)
    # nn.Linear(in, hidden): weight (H, D_in), bias (H,).  Stored transposed.
    w1_t = jax.random.normal(kw1, (D_in, H), dtype=jnp.float32) * 0.05
    b1 = jax.random.normal(kb1, (1, H), dtype=jnp.float32) * 0.05
    # nn.Linear(hidden, out): weight (D_out, H), bias (D_out,).  Stored transposed.
    w2_t = jax.random.normal(kw2, (H, D_out), dtype=jnp.float32) * 0.05
    b2 = jax.random.normal(kb2, (1, D_out), dtype=jnp.float32) * 0.05

    ref = mlp_reference(x, w1_t, b1, w2_t, b2)

    # f32 path: strict correctness check.
    out = mlp_pallas(x, w1_t, b1, w2_t, b2)
    out = jax.block_until_ready(out)
    assert out.shape == (B, N, D_out)
    assert jnp.allclose(out, ref, atol=1e-4, rtol=1e-4), "f32 mismatch vs reference"

    # bf16-MXU path (v6e/v7x fast path): loose tolerance vs the f32 reference.
    out_bf16 = mlp_pallas(x, w1_t, b1, w2_t, b2, compute_dtype=jnp.bfloat16)
    out_bf16 = jax.block_until_ready(out_bf16)
    assert out_bf16.shape == (B, N, D_out)
    assert jnp.allclose(out_bf16, ref, atol=5e-2, rtol=5e-2), "bf16 mismatch vs reference"

    print("KERNEL_OK")
</pallas_src>

<mosaic_0001>
module attributes {stable_mosaic.version = 11 : i64} {
  func.func @_mlp_kernel(%arg0: i32, %arg1: memref<8x32xf32, #tpu.memory_space<vmem>>, %arg2: memref<32x64xf32, #tpu.memory_space<vmem>>, %arg3: memref<1x64xf32, #tpu.memory_space<vmem>>, %arg4: memref<64x32xf32, #tpu.memory_space<vmem>>, %arg5: memref<1x32xf32, #tpu.memory_space<vmem>>, %arg6: memref<8x32xf32, #tpu.memory_space<vmem>>) attributes {dimension_semantics = [#tpu.dimension_semantics<parallel>], iteration_bounds = array<i64: 2>, scalar_prefetch = 0 : i64, scratch_operands = 0 : i64, tpu.core_type = #tpu.core_type<tc>, window_params = [{transform_indices = @transform_0, window_bounds = array<i64: 8, 32>}, {pipeline_mode = #tpu.pipeline_mode<synchronous>, transform_indices = @transform_1, window_bounds = array<i64: 32, 64>}, {pipeline_mode = #tpu.pipeline_mode<synchronous>, transform_indices = @transform_2, window_bounds = array<i64: 1, 64>}, {pipeline_mode = #tpu.pipeline_mode<synchronous>, transform_indices = @transform_3, window_bounds = array<i64: 64, 32>}, {pipeline_mode = #tpu.pipeline_mode<synchronous>, transform_indices = @transform_4, window_bounds = array<i64: 1, 32>}, {transform_indices = @transform_5, window_bounds = array<i64: 8, 32>}]} {
    %c0 = arith.constant 0 : index
    %c0_0 = arith.constant 0 : index
    %0 = vector.load %arg1[%c0, %c0_0] : memref<8x32xf32, #tpu.memory_space<vmem>>, vector<8x32xf32>
    %cst = arith.constant 0.000000e+00 : f32
    %1 = vector.broadcast %cst : f32 to vector<8x32xf32>
    %c0_1 = arith.constant 0 : index
    %c0_2 = arith.constant 0 : index
    %2 = vector.load %arg2[%c0_1, %c0_2] : memref<32x64xf32, #tpu.memory_space<vmem>>, vector<32x64xf32>
    %cst_3 = arith.constant dense<0.000000e+00> : vector<8x64xf32>
    %3 = tpu.matmul %0, %2, %cst_3 {dimension_numbers = #tpu.dot_dimension_numbers<[1], [0], [0], [1], [0, 0, 1, 1], [], []>} : vector<8x32xf32>, vector<32x64xf32>, vector<8x64xf32> -> vector<8x64xf32>
    %c0_4 = arith.constant 0 : index
    %c0_5 = arith.constant 0 : index
    %4 = vector.load %arg3[%c0_4, %c0_5] : memref<1x64xf32, #tpu.memory_space<vmem>>, vector<1x64xf32>
    %5 = vector.broadcast %4 : vector<1x64xf32> to vector<8x64xf32>
    %6 = arith.addf %3, %5 : vector<8x64xf32>
    %cst_6 = arith.constant 5.000000e-01 : f32
    %7 = vector.broadcast %cst_6 : f32 to vector<8x64xf32>
    %8 = arith.mulf %7, %6 : vector<8x64xf32>
    %cst_7 = arith.constant 4.471500e-02 : f32
    %9 = vector.broadcast %cst_7 : f32 to vector<8x64xf32>
    %10 = arith.mulf %9, %6 : vector<8x64xf32>
    %11 = arith.mulf %10, %6 : vector<8x64xf32>
    %12 = arith.mulf %11, %6 : vector<8x64xf32>
    %13 = arith.addf %6, %12 : vector<8x64xf32>
    %cst_8 = arith.constant 0.797884583 : f32
    %14 = vector.broadcast %cst_8 : f32 to vector<8x64xf32>
    %15 = arith.mulf %14, %13 : vector<8x64xf32>
    %16 = math.tanh %15 : vector<8x64xf32>
    %cst_9 = arith.constant 1.000000e+00 : f32
    %17 = vector.broadcast %cst_9 : f32 to vector<8x64xf32>
    %18 = arith.addf %17, %16 : vector<8x64xf32>
    %19 = arith.mulf %8, %18 : vector<8x64xf32>
    %c0_10 = arith.constant 0 : index
    %c0_11 = arith.constant 0 : index
    %20 = vector.load %arg4[%c0_10, %c0_11] : memref<64x32xf32, #tpu.memory_space<vmem>>, vector<64x32xf32>
    %cst_12 = arith.constant dense<0.000000e+00> : vector<8x32xf32>
    %21 = tpu.matmul %19, %20, %cst_12 {dimension_numbers = #tpu.dot_dimension_numbers<[1], [0], [0], [1], [0, 0, 1, 1], [], []>} : vector<8x64xf32>, vector<64x32xf32>, vector<8x32xf32> -> vector<8x32xf32>
    %22 = arith.addf %1, %21 : vector<8x32xf32>
    %c0_13 = arith.constant 0 : index
    %c0_14 = arith.constant 0 : index
    %23 = vector.load %arg5[%c0_13, %c0_14] : memref<1x32xf32, #tpu.memory_space<vmem>>, vector<1x32xf32>
    %24 = vector.broadcast %23 : vector<1x32xf32> to vector<8x32xf32>
    %25 = arith.addf %22, %24 : vector<8x32xf32>
    %c0_15 = arith.constant 0 : index
    %c0_16 = arith.constant 0 : index
    %26 = vector.load %arg6[%c0_15, %c0_16] : memref<8x32xf32, #tpu.memory_space<vmem>>, vector<8x32xf32>
    tpu.vector_store %arg6[%c0_15, %c0_16], %25 {strides = array<i32>} : memref<8x32xf32, #tpu.memory_space<vmem>>, vector<8x32xf32>,
    return
  }
  func.func @transform_0(%arg0: i32) -> (i32, i32) {
    %c0_i32 = arith.constant 0 : i32
    %c0_i32_0 = arith.constant 0 : i32
    return %arg0, %c0_i32 : i32, i32
  }
  func.func @transform_1(%arg0: i32) -> (i32, i32) {
    %c0_i32 = arith.constant 0 : i32
    %c0_i32_0 = arith.constant 0 : i32
    %c0_i32_1 = arith.constant 0 : i32
    return %c0_i32, %c0_i32_0 : i32, i32
  }
  func.func @transform_2(%arg0: i32) -> (i32, i32) {
    %c0_i32 = arith.constant 0 : i32
    %c0_i32_0 = arith.constant 0 : i32
    %c0_i32_1 = arith.constant 0 : i32
    return %c0_i32, %c0_i32_0 : i32, i32
  }
  func.func @transform_3(%arg0: i32) -> (i32, i32) {
    %c0_i32 = arith.constant 0 : i32
    %c0_i32_0 = arith.constant 0 : i32
    %c0_i32_1 = arith.constant 0 : i32
    return %c0_i32, %c0_i32_0 : i32, i32
  }
  func.func @transform_4(%arg0: i32) -> (i32, i32) {
    %c0_i32 = arith.constant 0 : i32
    %c0_i32_0 = arith.constant 0 : i32
    %c0_i32_1 = arith.constant 0 : i32
    return %c0_i32, %c0_i32_0 : i32, i32
  }
  func.func @transform_5(%arg0: i32) -> (i32, i32) {
    %c0_i32 = arith.constant 0 : i32
    %c0_i32_0 = arith.constant 0 : i32
    return %arg0, %c0_i32 : i32, i32
  }
}

module attributes {stable_mosaic.version = 11 : i64} {
  func.func @_mlp_kernel(%arg0: i32, %arg1: memref<8x32xf32, #tpu.memory_space<vmem>>, %arg2: memref<32x64xf32, #tpu.memory_space<vmem>>, %arg3: memref<1x64xf32, #tpu.memory_space<vmem>>, %arg4: memref<64x32xf32, #tpu.memory_space<vmem>>, %arg5: memref<1x32xf32, #tpu.memory_space<vmem>>, %arg6: memref<8x32xf32, #tpu.memory_space<vmem>>) attributes {dimension_semantics = [#tpu.dimension_semantics<parallel>], iteration_bounds = array<i64: 2>, scalar_prefetch = 0 : i64, scratch_operands = 0 : i64, tpu.core_type = #tpu.core_type<tc>, window_params = [{transform_indices = @transform_0, window_bounds = array<i64: 8, 32>}, {pipeline_mode = #tpu.pipeline_mode<synchronous>, transform_indices = @transform_1, window_bounds = array<i64: 32, 64>}, {pipeline_mode = #tpu.pipeline_mode<synchronous>, transform_indices = @transform_2, window_bounds = array<i64: 1, 64>}, {pipeline_mode = #tpu.pipeline_mode<synchronous>, transform_indices = @transform_3, window_bounds = array<i64: 64, 32>}, {pipeline_mode = #tpu.pipeline_mode<synchronous>, transform_indices = @transform_4, window_bounds = array<i64: 1, 32>}, {transform_indices = @transform_5, window_bounds = array<i64: 8, 32>}]} {
    %c0 = arith.constant 0 : index
    %c0_0 = arith.constant 0 : index
    %0 = vector.load %arg1[%c0, %c0_0] : memref<8x32xf32, #tpu.memory_space<vmem>>, vector<8x32xf32>
    %cst = arith.constant 0.000000e+00 : f32
    %1 = vector.broadcast %cst : f32 to vector<8x32xf32>
    %c0_1 = arith.constant 0 : index
    %c0_2 = arith.constant 0 : index
    %2 = vector.load %arg2[%c0_1, %c0_2] : memref<32x64xf32, #tpu.memory_space<vmem>>, vector<32x64xf32>
    %cst_3 = arith.constant dense<0.000000e+00> : vector<8x64xf32>
    %3 = tpu.matmul %0, %2, %cst_3 {dimension_numbers = #tpu.dot_dimension_numbers<[1], [0], [0], [1], [0, 0, 1, 1], [], []>} : vector<8x32xf32>, vector<32x64xf32>, vector<8x64xf32> -> vector<8x64xf32>
    %c0_4 = arith.constant 0 : index
    %c0_5 = arith.constant 0 : index
    %4 = vector.load %arg3[%c0_4, %c0_5] : memref<1x64xf32, #tpu.memory_space<vmem>>, vector<1x64xf32>
    %5 = vector.broadcast %4 : vector<1x64xf32> to vector<8x64xf32>
    %6 = arith.addf %3, %5 : vector<8x64xf32>
    %cst_6 = arith.constant 5.000000e-01 : f32
    %7 = vector.broadcast %cst_6 : f32 to vector<8x64xf32>
    %8 = arith.mulf %7, %6 : vector<8x64xf32>
    %cst_7 = arith.constant 4.471500e-02 : f32
    %9 = vector.broadcast %cst_7 : f32 to vector<8x64xf32>
    %10 = arith.mulf %9, %6 : vector<8x64xf32>
    %11 = arith.mulf %10, %6 : vector<8x64xf32>
    %12 = arith.mulf %11, %6 : vector<8x64xf32>
    %13 = arith.addf %6, %12 : vector<8x64xf32>
    %cst_8 = arith.constant 0.797884583 : f32
    %14 = vector.broadcast %cst_8 : f32 to vector<8x64xf32>
    %15 = arith.mulf %14, %13 : vector<8x64xf32>
    %16 = math.tanh %15 : vector<8x64xf32>
    %cst_9 = arith.constant 1.000000e+00 : f32
    %17 = vector.broadcast %cst_9 : f32 to vector<8x64xf32>
    %18 = arith.addf %17, %16 : vector<8x64xf32>
    %19 = arith.mulf %8, %18 : vector<8x64xf32>
    %c0_10 = arith.constant 0 : index
    %c0_11 = arith.constant 0 : index
    %20 = vector.load %arg4[%c0_10, %c0_11] : memref<64x32xf32, #tpu.memory_space<vmem>>, vector<64x32xf32>
    %cst_12 = arith.constant dense<0.000000e+00> : vector<8x32xf32>
    %21 = tpu.matmul %19, %20, %cst_12 {dimension_numbers = #tpu.dot_dimension_numbers<[1], [0], [0], [1], [0, 0, 1, 1], [], []>} : vector<8x64xf32>, vector<64x32xf32>, vector<8x32xf32> -> vector<8x32xf32>
    %22 = arith.addf %1, %21 : vector<8x32xf32>
    %c0_13 = arith.constant 0 : index
    %c0_14 = arith.constant 0 : index
    %23 = vector.load %arg5[%c0_13, %c0_14] : memref<1x32xf32, #tpu.memory_space<vmem>>, vector<1x32xf32>
    %24 = vector.broadcast %23 : vector<1x32xf32> to vector<8x32xf32>
    %25 = arith.addf %22, %24 : vector<8x32xf32>
    %c0_15 = arith.constant 0 : index
    %c0_16 = arith.constant 0 : index
    %26 = vector.load %arg6[%c0_15, %c0_16] : memref<8x32xf32, #tpu.memory_space<vmem>>, vector<8x32xf32>
    tpu.vector_store %arg6[%c0_15, %c0_16], %25 {strides = array<i32>} : memref<8x32xf32, #tpu.memory_space<vmem>>, vector<8x32xf32>,
    return
  }
  func.func @transform_0(%arg0: i32) -> (i32, i32) {
    %c0_i32 = arith.constant 0 : i32
    %c0_i32_0 = arith.constant 0 : i32
    return %arg0, %c0_i32 : i32, i32
  }
  func.func @transform_1(%arg0: i32) -> (i32, i32) {
    %c0_i32 = arith.constant 0 : i32
    %c0_i32_0 = arith.constant 0 : i32
    %c0_i32_1 = arith.constant 0 : i32
    return %c0_i32, %c0_i32_0 : i32, i32
  }
  func.func @transform_2(%arg0: i32) -> (i32, i32) {
    %c0_i32 = arith.constant 0 : i32
    %c0_i32_0 = arith.constant 0 : i32
    %c0_i32_1 = arith.constant 0 : i32
    return %c0_i32, %c0_i32_0 : i32, i32
  }
  func.func @transform_3(%arg0: i32) -> (i32, i32) {
    %c0_i32 = arith.constant 0 : i32
    %c0_i32_0 = arith.constant 0 : i32
    %c0_i32_1 = arith.constant 0 : i32
    return %c0_i32, %c0_i32_0 : i32, i32
  }
  func.func @transform_4(%arg0: i32) -> (i32, i32) {
    %c0_i32 = arith.constant 0 : i32
    %c0_i32_0 = arith.constant 0 : i32
    %c0_i32_1 = arith.constant 0 : i32
    return %c0_i32, %c0_i32_0 : i32, i32
  }
  func.func @transform_5(%arg0: i32) -> (i32, i32) {
    %c0_i32 = arith.constant 0 : i32
    %c0_i32_0 = arith.constant 0 : i32
    return %arg0, %c0_i32 : i32, i32
  }
}

</mosaic_0001>

<bundles_post_ra>
// kernel: tpu_custom_call.1
= control target key start
LH: loop header
LB: loop body
LE: loop exit
PB: predicated region body
PF: predicated region fallthrough
CT: control target
= control target key end

     0   :  { %10 = vsyncpa [#allocation3], 0  ;;  %s811_s0 = inlined_call_operand.vmem [shape: f32[16,32], index: 0, kind: input, shape index: {}]   ;;  %s812_s1 = inlined_call_operand.vmem [shape: f32[32,64], index: 1, kind: input, shape index: {}]   ;;  %s813_s2 = inlined_call_operand.vmem [shape: f32[1,64], index: 2, kind: input, shape index: {}]   ;;  %s814_s3 = inlined_call_operand.vmem [shape: f32[64,32], index: 3, kind: input, shape index: {}]   ;;  %s815_s4 = inlined_call_operand.vmem [shape: f32[1,32], index: 4, kind: input, shape index: {}]   ;;  %s816_s5 = inlined_call_operand.hbm [shape: f32[16,32], index: 5, kind: output, shape index: {}]  }
   0x1   :  { %12 = vsyncpa [#allocation3 + $0x1], 0  ;;  %s674_s18 = smov 0   ;;  %s676_s19 = smov 0  }
   0x2   :  { %s678_s20 = smov 0   ;;  %s680_s21 = smov 0  }
   0x3 LB: > { %s695_s22 = sadd.s32 4294967295, %s639_s21   ;;  %s478_s23 = sadd.s32 4294967294, %s639_s21   ;;  %s639_s21 = sphi %s680_s21, %s822_s21   ;;  %s635_s20 = sphi %s678_s20, %s821_s20   ;;  %s631_s19 = sphi %s676_s19, %s820_s19   ;;  %s627_s18 = sphi %s674_s18, %s819_s18  }
   0x4   : > { %s699_s24 = sadd.s32 1, %s639_s21   ;;  %s135_s25 = sadd.s32 1, %s635_s20 }
   0x5   : > { %s132_s26 = ssub.s32 %s639_s21, %s699_s24  ;;  %p145_p0 = scmp.ne.s32.totalorder %s635_s20, %s631_s19 }
   0x6   : > { %p133_p1 = scmp.eq.s32.totalorder %s132_s26, 0  ;;  %p146_p2 = scmp.eq.s32.totalorder %s695_s22, 1 }
   0x7   : > { %p151_p3 = scmp.ne.s32.totalorder %s631_s19, %s627_s18  ;;  %p152_p4 = scmp.eq.s32.totalorder %s478_s23, 1 }
   0x8   : > { %s710_s27 = scalar_select %p133_p1, %s635_s20, %s135_s25  }
   0x9   : > { %p712_p5 = por %p146_p2, %p145_p0  ;;  %p716_p6 = por %p152_p4, %p151_p3 }
   0xa   : > { %p481_p7 = scmp.ge.s32.totalorder %s639_s21, 1  ;;  %p189_p8 = scmp.lt.s32.totalorder %s639_s21, 3 }
   0xc   : > { %p190_p9 = pnand %p481_p7, %p189_p8 }
   0xd   : > { %p216_p10 = scmp.lt.s32.totalorder (!%p190_p9), %s695_s22, 1  ;;  %s213_s26 = sand.u32 (!%p190_p9), 1, %s631_s19  }
   0xe   : > { %193 = sbr.rel (%p190_p9) target bundleno = 459 (0x1cb), region = 40  ;;  %s482_s30 = sshll.u32 (!%p190_p9), %s213_s26, 3 }
   0xf   : > { %s489_s8 = sshll.u32 (!%p190_p9), %s695_s22, 7  ;;  %s406_s14 = scalar_lea.sflag (!%p190_p9), [#allocation3], %s213_s26 }
  0x10   : > { %s775_s13 = scalar_lea.hbm (!%p190_p9), %s816_s5, %s489_s8 }
  0x13   : > { %v224_v0 = vld [vmem:[%s812_s1 + $0x18] sm:$0xff]  ;;  %v641_v1 = vmov 0.0   ;;  %v223_v2 = vld [vmem:[%s812_s1 + $0x10] sm:$0xff]  ;;  %vm642_vm0 = vmmov 0   ;;  %s217_s9 = scalar_select %p216_p10, %s695_s22, 1  ;;  %v222_v3 = vld [vmem:[%s812_s1 + $0x8] sm:$0xff] }
  0x14   : > { %506 = vmatprep.subr.mxu0 %v641_v1  ;;  %514 = vmatprep.mubr.msk.f32.mxu0 %vm642_vm0, %v641_v1  ;;  %v221_v4 = vld [vmem:[%s812_s1] sm:$0xff]  ;;  %vm232_vm1 = vcmask 261120   ;;  %v322_v6 = vld [vmem:[%s814_s3 + $0x38] sm:$0xff]  ;;  %v321_v7 = vld [vmem:[%s814_s3 + $0x30] sm:$0xff]  ;;  %vm330_vm2 = vcmask 523264   ;;  %s643_s22 = smov [#allocation2]  }
  0x15   : > { %507 = vmatpush3.msra.mxu0 %v224_v0  ;;  %517 = vmatprep.subr.mxu1 %v641_v1  ;;  %s483_s12 = sshll.u32 %s217_s9, 3  ;;  %v320_v8 = vld [vmem:[%s814_s3 + $0x28] sm:$0xff]  ;;  %v319_v9 = vld [vmem:[%s814_s3 + $0x20] sm:$0xff]  ;;  %v318_v10 = vld [vmem:[%s814_s3 + $0x18] sm:$0xff]  ;;  %s215_s9 = scalar_lea.vmem [#allocation2], %s482_s30 }
  0x16   : > { %508 = vmatprep.subr.mxu0 %v641_v1  ;;  %533 = vmatprep.mubr.msk.f32.mxu1 %vm642_vm0, %v641_v1  ;;  %s219_s17 = scalar_lea.vmem %s811_s0, %s483_s12  ;;  %v317_v11 = vld [vmem:[%s814_s3 + $0x10] sm:$0xff]  ;;  %v316_v12 = vld [vmem:[%s814_s3 + $0x8] sm:$0xff]  ;;  %v315_v13 = vld [vmem:[%s814_s3] sm:$0xff]  ;;  %s419_s10 = sshll.u32 %s215_s9, 4  ;;  %s420_s10 = int_to_ptr.vmem [resolvable:$true] %s419_s10 }
  0x17   : > { %509 = vmatpush3.msra.mxu0 %v223_v2  ;;  %v220_v5 = vld [vmem:[%s219_s17] sm:$0xff]  ;;  %518 = vmatpush3.msra.mxu1 %v322_v6  ;;  %s579_s15 = scalar_lea.vmem %s420_s10, 128  ;;  %s583_s16 = sshll.u32 %s643_s22, 4  ;;  %s584_s16 = int_to_ptr.vmem [resolvable:$false] %s583_s16 }
  0x18   : > { %510 = vmatprep.subr.mxu0 %v641_v1  ;;  %519 = vmatprep.subr.mxu1 %v641_v1  ;;  %v484_v14 = vld [vmem:[%s813_s2] ss:$0 sm:$0xff]  ;;  %p580_p11 = scmp.ne.s32.totalorder %s420_s10, %s579_s15  ;;  %s585_s17 = scalar_lea.vmem %s584_s16, 256 }
  0x19   : > { %511 = vmatpush3.msra.mxu0 %v222_v3  ;;  %520 = vmatpush3.msra.mxu1 %v321_v7  ;;  %v486_v27 = vld [vmem:[%s815_s4] ss:$0 sm:$0xff]  ;;  %p586_p0 = scmp.lt.s32.totalorder %s420_s10, %s584_s16  ;;  %p587_p1 = scmp.lt.s32.totalorder %s585_s17, %s579_s15 }
  0x1a   : > { %512 = vmatprep.subr.mxu0 %v641_v1  ;;  %521 = vmatprep.subr.mxu1 %v641_v1  ;;  %p581_p12 = pnand %p580_p11, %p712_p5 }
  0x1b   : > { %513 = vmatpush3.msra.mxu0 %v221_v4  ;;  %522 = vmatpush3.msra.mxu1 %v320_v8  ;;  %p588_p2 = por %p587_p1, %p586_p0 }
  0x1c   : > { %515 = vmatmul.mubr.msk.f32.vlgmr.msra.gmra.mxu0 %vm232_vm1, %v220_v5  ;;  %523 = vmatprep.subr.mxu1 %v641_v1  ;;  %p582_p13 = pneg %p581_p12 }
  0x1d   : > { %524 = vmatpush3.msra.mxu1 %v319_v9 }
  0x1e   : > { %525 = vmatprep.subr.mxu1 %v641_v1  ;;  %p589_p3 = pnand %p588_p2, %p582_p13 }
  0x1f   : > { %526 = vmatpush3.msra.mxu1 %v318_v10 }
  0x20   : > { %527 = vmatprep.subr.mxu1 %v641_v1 }
  0x21   : > { %528 = vmatpush3.msra.mxu1 %v317_v11 }
  0x22   : > { %529 = vmatprep.subr.mxu1 %v641_v1 }
  0x23   : > { %530 = vmatpush3.msra.mxu1 %v316_v12 }
  0x24   : > { %531 = vmatprep.subr.mxu1 %v641_v1 }
  0x25   : > { %532 = vmatpush3.msra.mxu1 %v315_v13 }
  0xdc   : > { %v302_v15 = vpop.f32.mrf.mxu0 }
  0xdd   : > { %v303_v16 = vadd.f32 %v484_v14, %v302_v15 }
  0xde   : > { %v516_v17 = vpop.f32.mrf.mxu0 }
  0xdf   : > { %v307_v18 = vmul.f32 0.044715, %v303_v16  ;;  %v306_v24 = vmul.f32 0.5, %v303_v16 }
  0xe1   : > { %v308_v19 = vmul.f32 %v307_v18, %v303_v16 }
  0xe3   : > { %v309_v20 = vmul.f32 %v308_v19, %v303_v16 }
  0xe5   : > { %v310_v21 = vadd.f32 %v309_v20, %v303_v16 }
  0xe7   : > { %v311_v22 = vmul.f32 0.7978846, %v310_v21 }
  0xe9   : > { %577 = vtanh.f32 %v311_v22 }
  0xf6   : > { %v578_v23 = vpop.eup %577 }
  0xf7   : > { %v313_v25 = vadd.f32 1.0, %v578_v23 }
  0xf9   : > { %v314_v26 = vmul.f32 %v313_v25, %v306_v24 }
  0xfb   : > { %534 = vmatmul.mubr.msk.f32.vlgmr.msra.gmra.mxu1 %vm330_vm2, %v314_v26 }
 0x1bb   : > { %v400_v28 = vpop.f32.mrf.mxu1 }
 0x1bc   : > { %v401_v29 = vadd.f32 %v486_v27, %v400_v28 }
 0x1bd   : > { %v535_v30 = vpop.f32.mrf.mxu1 }
 0x1be   : > { %404 = vst.msk [vmem:[%s215_s9] sm:$0xff] %vm232_vm1, %v401_v29 }
 0x1bf   : > { %592 = shalt.err (!%p589_p3)
}
 0x1c0   : > { %s593_s23 = scalar_lea.hbm %s775_s13, 128  ;;  %s597_s30 = scalar_lea.hbm %s816_s5, 256 }
 0x1c1   : > { %p594_p4 = scmp.ne.s32.totalorder %s775_s13, %s593_s23  ;;  %p598_p9 = scmp.lt.s32.totalorder %s775_s13, %s816_s5 }
 0x1c2   : > { %p599_p10 = scmp.lt.s32.totalorder %s597_s30, %s593_s23 }
 0x1c3   : > { %p595_p7 = pnand %p594_p4, %p712_p5 }
 0x1c4   : > { %p600_p11 = por %p599_p10, %p598_p9 }
 0x1c5   : > { %p596_p8 = pneg %p595_p7 }
 0x1c7   : > { %p601_p12 = pnand %p600_p11, %p596_p8 }
 0x1c9   : > { %604 = shalt.err (!%p601_p12)
}
 0x1ca   : > { %536 = dma.vmem_to_hbm [thread:$0]  (%p712_p5), %s420_s10, 128, %s775_s13, %s406_s14  }
 0x1cb PF: > { %p542_p13 = scmp.ge.s32.totalorder %s639_s21, 2  ;;  %s431_s8 = sand.u32 1, %s627_s18  }
 0x1cc   : > { %s432_s9 = scalar_lea.sflag [#allocation3], %s431_s8 }
 0x1cd   : > { %p539_p0 = pnand %p542_p13, %p716_p6 }
 0x1cf   : > { %p540_p1 = pneg %p539_p0 }
 0x1d1   : > { %622 = dma.done.wait (%p540_p1), %s432_s9, 128  }
 0x1d2   : > { %624 = vsyncadd (%p540_p1), %s432_s9, 4294967168  ;;  %p15_p2 = scmp.ge.s32.totalorder %s699_s24, 4   ;;  %s819_s18 = smov %s631_s19 }
 0x1d3   : > { %s820_s19 = smov %s635_s20  ;;  %s821_s20 = smov %s710_s27 }
 0x1d4   : > { %s822_s21 = smov %s699_s24  ;;  %17 = sbr.rel (!%p15_p2) target bundleno = 3 (0x3), region = 75 }
 0x1d9   :  { %437 = vsyncpa [#allocation3], 1 }
 0x1da   :  { %439 = vsyncpa [#allocation3 + $0x1], 1 }

// kernel: tpu_custom_call.1
= control target key start
LH: loop header
LB: loop body
LE: loop exit
PB: predicated region body
PF: predicated region fallthrough
CT: control target
= control target key end

     0   :  { %10 = vsyncpa [#allocation3], 0  ;;  %s811_s0 = inlined_call_operand.vmem [shape: f32[16,32], index: 0, kind: input, shape index: {}]   ;;  %s812_s1 = inlined_call_operand.vmem [shape: f32[32,64], index: 1, kind: input, shape index: {}]   ;;  %s813_s2 = inlined_call_operand.vmem [shape: f32[1,64], index: 2, kind: input, shape index: {}]   ;;  %s814_s3 = inlined_call_operand.vmem [shape: f32[64,32], index: 3, kind: input, shape index: {}]   ;;  %s815_s4 = inlined_call_operand.vmem [shape: f32[1,32], index: 4, kind: input, shape index: {}]   ;;  %s816_s5 = inlined_call_operand.hbm [shape: f32[16,32], index: 5, kind: output, shape index: {}]  }
   0x1   :  { %12 = vsyncpa [#allocation3 + $0x1], 0  ;;  %s674_s18 = smov 0   ;;  %s676_s19 = smov 0  }
   0x2   :  { %s678_s20 = smov 0   ;;  %s680_s21 = smov 0  }
   0x3 LB: > { %s695_s22 = sadd.s32 4294967295, %s639_s21   ;;  %s478_s23 = sadd.s32 4294967294, %s639_s21   ;;  %s639_s21 = sphi %s680_s21, %s822_s21   ;;  %s635_s20 = sphi %s678_s20, %s821_s20   ;;  %s631_s19 = sphi %s676_s19, %s820_s19   ;;  %s627_s18 = sphi %s674_s18, %s819_s18  }
   0x4   : > { %s699_s24 = sadd.s32 1, %s639_s21   ;;  %s135_s25 = sadd.s32 1, %s635_s20 }
   0x5   : > { %s132_s26 = ssub.s32 %s639_s21, %s699_s24  ;;  %p145_p0 = scmp.ne.s32.totalorder %s635_s20, %s631_s19 }
   0x6   : > { %p133_p1 = scmp.eq.s32.totalorder %s132_s26, 0  ;;  %p146_p2 = scmp.eq.s32.totalorder %s695_s22, 1 }
   0x7   : > { %p151_p3 = scmp.ne.s32.totalorder %s631_s19, %s627_s18  ;;  %p152_p4 = scmp.eq.s32.totalorder %s478_s23, 1 }
   0x8   : > { %s710_s27 = scalar_select %p133_p1, %s635_s20, %s135_s25  }
   0x9   : > { %p712_p5 = por %p146_p2, %p145_p0  ;;  %p716_p6 = por %p152_p4, %p151_p3 }
   0xa   : > { %p481_p7 = scmp.ge.s32.totalorder %s639_s21, 1  ;;  %p189_p8 = scmp.lt.s32.totalorder %s639_s21, 3 }
   0xc   : > { %p190_p9 = pnand %p481_p7, %p189_p8 }
   0xd   : > { %p216_p10 = scmp.lt.s32.totalorder (!%p190_p9), %s695_s22, 1  ;;  %s213_s26 = sand.u32 (!%p190_p9), 1, %s631_s19  }
   0xe   : > { %193 = sbr.rel (%p190_p9) target bundleno = 459 (0x1cb), region = 40  ;;  %s482_s30 = sshll.u32 (!%p190_p9), %s213_s26, 3 }
   0xf   : > { %s489_s8 = sshll.u32 (!%p190_p9), %s695_s22, 7  ;;  %s406_s14 = scalar_lea.sflag (!%p190_p9), [#allocation3], %s213_s26 }
  0x10   : > { %s775_s13 = scalar_lea.hbm (!%p190_p9), %s816_s5, %s489_s8 }
  0x13   : > { %v224_v0 = vld [vmem:[%s812_s1 + $0x18] sm:$0xff]  ;;  %v641_v1 = vmov 0.0   ;;  %v223_v2 = vld [vmem:[%s812_s1 + $0x10] sm:$0xff]  ;;  %vm642_vm0 = vmmov 0   ;;  %s217_s9 = scalar_select %p216_p10, %s695_s22, 1  ;;  %v222_v3 = vld [vmem:[%s812_s1 + $0x8] sm:$0xff] }
  0x14   : > { %506 = vmatprep.subr.mxu0 %v641_v1  ;;  %514 = vmatprep.mubr.msk.f32.mxu0 %vm642_vm0, %v641_v1  ;;  %v221_v4 = vld [vmem:[%s812_s1] sm:$0xff]  ;;  %vm232_vm1 = vcmask 261120   ;;  %v322_v6 = vld [vmem:[%s814_s3 + $0x38] sm:$0xff]  ;;  %v321_v7 = vld [vmem:[%s814_s3 + $0x30] sm:$0xff]  ;;  %vm330_vm2 = vcmask 523264   ;;  %s643_s22 = smov [#allocation2]  }
  0x15   : > { %507 = vmatpush3.msra.mxu0 %v224_v0  ;;  %517 = vmatprep.subr.mxu1 %v641_v1  ;;  %s483_s12 = sshll.u32 %s217_s9, 3  ;;  %v320_v8 = vld [vmem:[%s814_s3 + $0x28] sm:$0xff]  ;;  %v319_v9 = vld [vmem:[%s814_s3 + $0x20] sm:$0xff]  ;;  %v318_v10 = vld [vmem:[%s814_s3 + $0x18] sm:$0xff]  ;;  %s215_s9 = scalar_lea.vmem [#allocation2], %s482_s30 }
  0x16   : > { %508 = vmatprep.subr.mxu0 %v641_v1  ;;  %533 = vmatprep.mubr.msk.f32.mxu1 %vm642_vm0, %v641_v1  ;;  %s219_s17 = scalar_lea.vmem %s811_s0, %s483_s12  ;;  %v317_v11 = vld [vmem:[%s814_s3 + $0x10] sm:$0xff]  ;;  %v316_v12 = vld [vmem:[%s814_s3 + $0x8] sm:$0xff]  ;;  %v315_v13 = vld [vmem:[%s814_s3] sm:$0xff]  ;;  %s419_s10 = sshll.u32 %s215_s9, 4  ;;  %s420_s10 = int_to_ptr.vmem [resolvable:$true] %s419_s10 }
  0x17   : > { %509 = vmatpush3.msra.mxu0 %v223_v2  ;;  %v220_v5 = vld [vmem:[%s219_s17] sm:$0xff]  ;;  %518 = vmatpush3.msra.mxu1 %v322_v6  ;;  %s579_s15 = scalar_lea.vmem %s420_s10, 128  ;;  %s583_s16 = sshll.u32 %s643_s22, 4  ;;  %s584_s16 = int_to_ptr.vmem [resolvable:$false] %s583_s16 }
  0x18   : > { %510 = vmatprep.subr.mxu0 %v641_v1  ;;  %519 = vmatprep.subr.mxu1 %v641_v1  ;;  %v484_v14 = vld [vmem:[%s813_s2] ss:$0 sm:$0xff]  ;;  %p580_p11 = scmp.ne.s32.totalorder %s420_s10, %s579_s15  ;;  %s585_s17 = scalar_lea.vmem %s584_s16, 256 }
  0x19   : > { %511 = vmatpush3.msra.mxu0 %v222_v3  ;;  %520 = vmatpush3.msra.mxu1 %v321_v7  ;;  %v486_v27 = vld [vmem:[%s815_s4] ss:$0 sm:$0xff]  ;;  %p586_p0 = scmp.lt.s32.totalorder %s420_s10, %s584_s16  ;;  %p587_p1 = scmp.lt.s32.totalorder %s585_s17, %s579_s15 }
  0x1a   : > { %512 = vmatprep.subr.mxu0 %v641_v1  ;;  %521 = vmatprep.subr.mxu1 %v641_v1  ;;  %p581_p12 = pnand %p580_p11, %p712_p5 }
  0x1b   : > { %513 = vmatpush3.msra.mxu0 %v221_v4  ;;  %522 = vmatpush3.msra.mxu1 %v320_v8  ;;  %p588_p2 = por %p587_p1, %p586_p0 }
  0x1c   : > { %515 = vmatmul.mubr.msk.f32.vlgmr.msra.gmra.mxu0 %vm232_vm1, %v220_v5  ;;  %523 = vmatprep.subr.mxu1 %v641_v1  ;;  %p582_p13 = pneg %p581_p12 }
  0x1d   : > { %524 = vmatpush3.msra.mxu1 %v319_v9 }
  0x1e   : > { %525 = vmatprep.subr.mxu1 %v641_v1  ;;  %p589_p3 = pnand %p588_p2, %p582_p13 }
  0x1f   : > { %526 = vmatpush3.msra.mxu1 %v318_v10 }
  0x20   : > { %527 = vmatprep.subr.mxu1 %v641_v1 }
  0x21   : > { %528 = vmatpush3.msra.mxu1 %v317_v11 }
  0x22   : > { %529 = vmatprep.subr.mxu1 %v641_v1 }
  0x23   : > { %530 = vmatpush3.msra.mxu1 %v316_v12 }
  0x24   : > { %531 = vmatprep.subr.mxu1 %v641_v1 }
  0x25   : > { %532 = vmatpush3.msra.mxu1 %v315_v13 }
  0xdc   : > { %v302_v15 = vpop.f32.mrf.mxu0 }
  0xdd   : > { %v303_v16 = vadd.f32 %v484_v14, %v302_v15 }
  0xde   : > { %v516_v17 = vpop.f32.mrf.mxu0 }
  0xdf   : > { %v307_v18 = vmul.f32 0.044715, %v303_v16  ;;  %v306_v24 = vmul.f32 0.5, %v303_v16 }
  0xe1   : > { %v308_v19 = vmul.f32 %v307_v18, %v303_v16 }
  0xe3   : > { %v309_v20 = vmul.f32 %v308_v19, %v303_v16 }
  0xe5   : > { %v310_v21 = vadd.f32 %v309_v20, %v303_v16 }
  0xe7   : > { %v311_v22 = vmul.f32 0.7978846, %v310_v21 }
  0xe9   : > { %577 = vtanh.f32 %v311_v22 }
  0xf6   : > { %v578_v23 = vpop.eup %577 }
  0xf7   : > { %v313_v25 = vadd.f32 1.0, %v578_v23 }
  0xf9   : > { %v314_v26 = vmul.f32 %v313_v25, %v306_v24 }
  0xfb   : > { %534 = vmatmul.mubr.msk.f32.vlgmr.msra.gmra.mxu1 %vm330_vm2, %v314_v26 }
 0x1bb   : > { %v400_v28 = vpop.f32.mrf.mxu1 }
 0x1bc   : > { %v401_v29 = vadd.f32 %v486_v27, %v400_v28 }
 0x1bd   : > { %v535_v30 = vpop.f32.mrf.mxu1 }
 0x1be   : > { %404 = vst.msk [vmem:[%s215_s9] sm:$0xff] %vm232_vm1, %v401_v29 }
 0x1bf   : > { %592 = shalt.err (!%p589_p3)
}
 0x1c0   : > { %s593_s23 = scalar_lea.hbm %s775_s13, 128  ;;  %s597_s30 = scalar_lea.hbm %s816_s5, 256 }
 0x1c1   : > { %p594_p4 = scmp.ne.s32.totalorder %s775_s13, %s593_s23  ;;  %p598_p9 = scmp.lt.s32.totalorder %s775_s13, %s816_s5 }
 0x1c2   : > { %p599_p10 = scmp.lt.s32.totalorder %s597_s30, %s593_s23 }
 0x1c3   : > { %p595_p7 = pnand %p594_p4, %p712_p5 }
 0x1c4   : > { %p600_p11 = por %p599_p10, %p598_p9 }
 0x1c5   : > { %p596_p8 = pneg %p595_p7 }
 0x1c7   : > { %p601_p12 = pnand %p600_p11, %p596_p8 }
 0x1c9   : > { %604 = shalt.err (!%p601_p12)
}
 0x1ca   : > { %536 = dma.vmem_to_hbm [thread:$0]  (%p712_p5), %s420_s10, 128, %s775_s13, %s406_s14  }
 0x1cb PF: > { %p542_p13 = scmp.ge.s32.totalorder %s639_s21, 2  ;;  %s431_s8 = sand.u32 1, %s627_s18  }
 0x1cc   : > { %s432_s9 = scalar_lea.sflag [#allocation3], %s431_s8 }
 0x1cd   : > { %p539_p0 = pnand %p542_p13, %p716_p6 }
 0x1cf   : > { %p540_p1 = pneg %p539_p0 }
 0x1d1   : > { %622 = dma.done.wait (%p540_p1), %s432_s9, 128  }
 0x1d2   : > { %624 = vsyncadd (%p540_p1), %s432_s9, 4294967168  ;;  %p15_p2 = scmp.ge.s32.totalorder %s699_s24, 4   ;;  %s819_s18 = smov %s631_s19 }
 0x1d3   : > { %s820_s19 = smov %s635_s20  ;;  %s821_s20 = smov %s710_s27 }
 0x1d4   : > { %s822_s21 = smov %s699_s24  ;;  %17 = sbr.rel (!%p15_p2) target bundleno = 3 (0x3), region = 75 }
 0x1d9   :  { %437 = vsyncpa [#allocation3], 1 }
 0x1da   :  { %439 = vsyncpa [#allocation3 + $0x1], 1 }

</bundles_post_ra>
